<compile_context>
chip_gen: v7x
topology: tpu7x:2x2x1
jax: 0.10.0
libtpu: 0.0.40
codegen_flags: <defaults>
</compile_context>

<pallas_src>
import jax
import jax.numpy as jnp
from jax.experimental import pallas as pl
from jax.experimental.pallas import tpu as pltpu


def _res_trans_kernel(x_ref, wfc_ref, tres_ref, bfc_ref, wc1_ref, wc2_ref,
                      bcls_ref, out_ref, acc_ref):
    c = pl.program_id(1)

    @pl.when(c == 0)
    def _():
        acc_ref[...] = jnp.zeros_like(acc_ref)

    TB, TC, S = x_ref.shape
    n128 = S // 128
    rem = S - n128 * 128

    # Spatial (lane-axis) sum for this (batch, channel) chunk.
    # Fold 128-lane aligned slices with VPU adds (f32 accumulation), then do a
    # single narrow cross-lane reduce per block (not per grid step).
    if n128 > 0:
        folded = x_ref[:, :, pl.ds(0, 128)].astype(jnp.float32)      # (TB,TC,128)
        for i in range(1, n128):                                     # static unroll
            folded = folded + x_ref[:, :, pl.ds(i * 128, 128)].astype(jnp.float32)
        pooled = jnp.sum(folded, axis=-1)                            # (TB, TC)
        if rem:
            pooled = pooled + jnp.sum(
                x_ref[:, :, pl.ds(n128 * 128, rem)].astype(jnp.float32), axis=-1)
    else:
        pooled = jnp.sum(x_ref[...].astype(jnp.float32), axis=-1)    # S < 128

    # Partial fc contribution of this channel chunk (MXU); contraction over C
    # is accumulated across the channel grid axis.
    acc_ref[...] += jnp.dot(pooled, wfc_ref[...],
                            preferred_element_type=jnp.float32)      # (TB, nc)

    @pl.when(c == pl.num_programs(1) - 1)
    def _():
        inv_hw = jnp.float32(1.0 / S)
        # AdaptiveAvgPool2d((1,1)) + fc: divide the accumulated sum once.
        base = acc_ref[...] * inv_hw + bfc_ref[...]                  # (TB, nc)

        # cat([base, vit_out], dim=1) followed by Linear(2*nc, nc), split as:
        #   pred = base @ Wcls[:, :nc].T + vit_out @ Wcls[:, nc:].T + b_cls
        tres = tres_ref[...][:, 0, :]                                # (TB, nc)
        pred = (jnp.dot(base, wc1_ref[...], preferred_element_type=jnp.float32)
                + jnp.dot(tres, wc2_ref[...], preferred_element_type=jnp.float32)
                + bcls_ref[...])                                     # (TB, nc)

        out_ref[...] = pred[:, None, :].astype(out_ref.dtype)


def _vmem_capacity_bytes():
    try:
        return int(pltpu.get_tpu_info().vmem_capacity_bytes)
    except Exception:
        return 64 << 20  # conservative (v7x physical VMEM per TC)


def _pick_batch_tile(B, tile_b=None):
    if tile_b is not None:
        assert B % tile_b == 0, (B, tile_b)
        return tile_b
    # Prefer >= 2 batch tiles so the "parallel" axis can feed both v7x
    # TensorCores; largest such tile first.
    for t in (8, 4, 2, 1):
        if B % t == 0 and B // t >= 2:
            return t
    return B  # B == 1


def _pick_channel_tile(C, TB, S, itemsize, budget, tile_c=None):
    if tile_c is not None:
        assert C % tile_c == 0 and (tile_c % 8 == 0 or tile_c == C), (C, tile_c)
        return tile_c
    cands = [t for t in range(8, C + 1, 8) if C % t == 0]
    if not cands:
        return C  # C not a multiple of 8: take all channels at once
    fitting = [t for t in cands if TB * t * S * itemsize <= budget]
    return max(fitting) if fitting else min(cands)


def res_trans_block(base_res, transformer_res, w_fc, b_fc, w_cls, b_cls,
                    *, tile_b=None, tile_c=None):
    """base_res: (B, C, H, W) NCHW, native dtype (bf16 or f32).
    transformer_res: (B, num_class) = vit(diff_tensor) (precomputed, see TODO)."""
    B, C, H, W = base_res.shape
    S = H * W
    num_class = w_fc.shape[0]
    assert w_fc.shape == (num_class, C)
    assert b_fc.shape == (num_class,)
    assert w_cls.shape == (num_class, 2 * num_class)
    assert b_cls.shape == (num_class,)
    assert transformer_res.shape == (B, num_class)

    # Flatten spatial onto the lane axis; no dtype upcast of the big tensor.
    x = base_res.reshape(B, C, S)
    itemsize = x.dtype.itemsize

    # Tiny parameters: pre-transpose / split in f32 (negligible bytes).
    wfc_t = w_fc.T.astype(jnp.float32)                    # (C, nc)
    wc1_t = w_cls[:, :num_class].T.astype(jnp.float32)    # (nc, nc) acts on base
    wc2_t = w_cls[:, num_class:].T.astype(jnp.float32)    # (nc, nc) acts on vit out
    bfc = b_fc.reshape(1, num_class).astype(jnp.float32)
    bcls = b_cls.reshape(1, num_class).astype(jnp.float32)
    # Unit middle dim keeps the (8,128)-rule trivially satisfied for any TB.
    tres = transformer_res.reshape(B, 1, num_class).astype(jnp.float32)

    # Generation-aware tiling: ~8 MiB blocks on v7x (64 MiB VMEM), up to 12 MiB
    # on v5e/v6e; Pallas double-buffers the streamed input.
    vmem_cap = _vmem_capacity_bytes()
    budget = max(1 << 20, min(12 << 20, vmem_cap // 8))

    TB = _pick_batch_tile(B, tile_b)
    TC = _pick_channel_tile(C, TB, S, itemsize, budget, tile_c)
    assert B % TB == 0 and C % TC == 0

    block_bytes = TB * TC * S * itemsize
    needed = 2 * block_bytes + 2 * TC * num_class * 4 + (4 << 20)
    vmem_limit = int(min(max(needed, 32 << 20),
                         max(vmem_cap - (8 << 20), 16 << 20)))

    grid = (B // TB, C // TC)

    cost = pl.CostEstimate(
        flops=int(2 * B * C * S + 2 * B * C * num_class
                  + 4 * B * num_class * num_class),
        transcendentals=0,
        bytes_accessed=int(B * C * S * itemsize + C * num_class * 4
                           + 2 * B * num_class * 4
                           + 2 * num_class * num_class * 4))

    out3 = pl.pallas_call(
        _res_trans_kernel,
        out_shape=jax.ShapeDtypeStruct((B, 1, num_class), jnp.float32),
        grid_spec=pltpu.PrefetchScalarGridSpec(
            num_scalar_prefetch=0,
            grid=grid,
            in_specs=[
                # Streamed, double-buffered big input: full S per block, tiled
                # over (batch, channel).
                pl.BlockSpec((TB, TC, S), lambda b, c: (b, c, 0)),
                # fc weight chunk for this channel tile.
                pl.BlockSpec((TC, num_class), lambda b, c: (c, 0)),
                # Small tensors: constant block index along the channel
                # (reduction) axis so they stay resident in VMEM.
                pl.BlockSpec((TB, 1, num_class), lambda b, c: (b, 0, 0)),
                pl.BlockSpec((1, num_class), lambda b, c: (0, 0)),
                pl.BlockSpec((num_class, num_class), lambda b, c: (0, 0)),
                pl.BlockSpec((num_class, num_class), lambda b, c: (0, 0)),
                pl.BlockSpec((1, num_class), lambda b, c: (0, 0)),
            ],
            out_specs=pl.BlockSpec((TB, 1, num_class), lambda b, c: (b, 0, 0)),
            scratch_shapes=[pltpu.VMEM((TB, num_class), jnp.float32)],
        ),
        compiler_params=pltpu.CompilerParams(
            dimension_semantics=("parallel", "arbitrary"),
            vmem_limit_bytes=vmem_limit),
        cost_estimate=cost,
    )(x, wfc_t, tres, bfc, wc1_t, wc2_t, bcls)

    return out3.reshape(B, num_class)


if __name__ == "__main__":
    # Small shapes consistent with the module (num_channels_fc -> C, num_class -> NC).
    # S = 16*18 = 288 exercises the 128-lane fold (2 full slices) plus the
    # non-multiple-of-128 remainder path; tile_c=16 forces 2 channel grid steps
    # so the cross-step fc accumulation is exercised; TB auto-picks 1 (2 batch tiles).
    B, C, H, W = 2, 32, 16, 18
    NC = 8

    key = jax.random.PRNGKey(0)
    k_x, k_t, k_wfc, k_bfc, k_wcls, k_bcls = jax.random.split(key, 6)

    base_res = jax.random.normal(k_x, (B, C, H, W), dtype=jnp.float32)
    # Stand-in for self.vit(diff_tensor) output (see TODO(synk) above).
    transformer_res = jax.random.normal(k_t, (B, NC), dtype=jnp.float32)

    # nn.Linear convention: weight shape (out_features, in_features).
    w_fc = jax.random.normal(k_wfc, (NC, C), dtype=jnp.float32) * 0.05
    b_fc = jax.random.normal(k_bfc, (NC,), dtype=jnp.float32) * 0.05
    w_cls = jax.random.normal(k_wcls, (NC, 2 * NC), dtype=jnp.float32) * 0.05
    b_cls = jax.random.normal(k_bcls, (NC,), dtype=jnp.float32) * 0.05

    out = res_trans_block(base_res, transformer_res, w_fc, b_fc, w_cls, b_cls,
                          tile_c=16)
    out = jax.block_until_ready(out)

    # Pure-JAX reference for sanity.
    pooled_ref = jnp.mean(base_res, axis=(2, 3))                       # (B, C)
    base_ref = pooled_ref @ w_fc.T + b_fc                              # (B, NC)
    enh_ref = jnp.concatenate([base_ref, transformer_res], axis=1)     # (B, 2*NC)
    pred_ref = enh_ref @ w_cls.T + b_cls                               # (B, NC)

    assert out.shape == (B, NC), out.shape
    assert jnp.allclose(out, pred_ref, atol=1e-4, rtol=1e-4), (
        float(jnp.max(jnp.abs(out - pred_ref))))

    print("KERNEL_OK")
</pallas_src>

<mosaic_0001>
module attributes {stable_mosaic.version = 11 : i64} {
  func.func @_res_trans_kernel(%arg0: i32, %arg1: i32, %arg2: memref<1x16x288xf32, #tpu.memory_space<vmem>>, %arg3: memref<16x8xf32, #tpu.memory_space<vmem>>, %arg4: memref<1x1x8xf32, #tpu.memory_space<vmem>>, %arg5: memref<1x8xf32, #tpu.memory_space<vmem>>, %arg6: memref<8x8xf32, #tpu.memory_space<vmem>>, %arg7: memref<8x8xf32, #tpu.memory_space<vmem>>, %arg8: memref<1x8xf32, #tpu.memory_space<vmem>>, %arg9: memref<1x1x8xf32, #tpu.memory_space<vmem>>, %arg10: memref<1x8xf32, #tpu.memory_space<vmem>>) attributes {dimension_semantics = [#tpu.dimension_semantics<parallel>, #tpu.dimension_semantics<arbitrary>], iteration_bounds = array<i64: 2, 2>, scalar_prefetch = 0 : i64, scratch_operands = 1 : i64, tpu.core_type = #tpu.core_type<tc>, window_params = [{transform_indices = @transform_0, window_bounds = array<i64: 1, 16, 288>}, {transform_indices = @transform_1, window_bounds = array<i64: 16, 8>}, {transform_indices = @transform_2, window_bounds = array<i64: 1, 1, 8>}, {pipeline_mode = #tpu.pipeline_mode<synchronous>, transform_indices = @transform_3, window_bounds = array<i64: 1, 8>}, {pipeline_mode = #tpu.pipeline_mode<synchronous>, transform_indices = @transform_4, window_bounds = array<i64: 8, 8>}, {pipeline_mode = #tpu.pipeline_mode<synchronous>, transform_indices = @transform_5, window_bounds = array<i64: 8, 8>}, {pipeline_mode = #tpu.pipeline_mode<synchronous>, transform_indices = @transform_6, window_bounds = array<i64: 1, 8>}, {transform_indices = @transform_7, window_bounds = array<i64: 1, 1, 8>}]} {
    %c0_i32 = arith.constant 0 : i32
    %0 = arith.cmpi eq, %arg1, %c0_i32 : i32
    %1 = arith.extui %0 : i1 to i32
    %c0_i32_0 = arith.constant 0 : i32
    %2 = arith.cmpi ne, %1, %c0_i32_0 : i32
    scf.if %2 {
      %cst_16 = arith.constant 0.000000e+00 : f32
      %18 = vector.broadcast %cst_16 : f32 to vector<1x8xf32>
      %c0_17 = arith.constant 0 : index
      %c0_18 = arith.constant 0 : index
      %19 = vector.load %arg10[%c0_17, %c0_18] : memref<1x8xf32, #tpu.memory_space<vmem>>, vector<1x8xf32>
      tpu.vector_store %arg10[%c0_17, %c0_18], %18 {strides = array<i32>} : memref<1x8xf32, #tpu.memory_space<vmem>>, vector<1x8xf32>,
    } else {
    }
    %c0 = arith.constant 0 : index
    %c0_1 = arith.constant 0 : index
    %c0_2 = arith.constant 0 : index
    %3 = vector.load %arg2[%c0, %c0_1, %c0_2] : memref<1x16x288xf32, #tpu.memory_space<vmem>>, vector<1x16x128xf32>
    %c0_3 = arith.constant 0 : index
    %c0_4 = arith.constant 0 : index
    %c128 = arith.constant 128 : index
    %4 = vector.load %arg2[%c0_3, %c0_4, %c128] : memref<1x16x288xf32, #tpu.memory_space<vmem>>, vector<1x16x128xf32>
    %5 = arith.addf %3, %4 : vector<1x16x128xf32>
    %cst = arith.constant dense<0.000000e+00> : vector<1x16xf32>
    %6 = vector.multi_reduction <add>, %5, %cst [2] : vector<1x16x128xf32> to vector<1x16xf32>
    %c0_5 = arith.constant 0 : index
    %c0_6 = arith.constant 0 : index
    %c256 = arith.constant 256 : index
    %7 = vector.load %arg2[%c0_5, %c0_6, %c256] : memref<1x16x288xf32, #tpu.memory_space<vmem>>, vector<1x16x32xf32>
    %cst_7 = arith.constant dense<0.000000e+00> : vector<1x16xf32>
    %8 = vector.multi_reduction <add>, %7, %cst_7 [2] : vector<1x16x32xf32> to vector<1x16xf32>
    %9 = arith.addf %6, %8 : vector<1x16xf32>
    %c0_8 = arith.constant 0 : index
    %c0_9 = arith.constant 0 : index
    %10 = vector.load %arg10[%c0_8, %c0_9] : memref<1x8xf32, #tpu.memory_space<vmem>>, vector<1x8xf32>
    %c0_10 = arith.constant 0 : index
    %c0_11 = arith.constant 0 : index
    %11 = vector.load %arg3[%c0_10, %c0_11] : memref<16x8xf32, #tpu.memory_space<vmem>>, vector<16x8xf32>
    %cst_12 = arith.constant dense<0.000000e+00> : vector<1x8xf32>
    %12 = tpu.matmul %9, %11, %cst_12 {dimension_numbers = #tpu.dot_dimension_numbers<[1], [0], [0], [1], [0, 0, 1, 1], [], []>} : vector<1x16xf32>, vector<16x8xf32>, vector<1x8xf32> -> vector<1x8xf32>
    %13 = arith.addf %10, %12 : vector<1x8xf32>
    %c0_13 = arith.constant 0 : index
    %c0_14 = arith.constant 0 : index
    %14 = vector.load %arg10[%c0_13, %c0_14] : memref<1x8xf32, #tpu.memory_space<vmem>>, vector<1x8xf32>
    tpu.vector_store %arg10[%c0_13, %c0_14], %13 {strides = array<i32>} : memref<1x8xf32, #tpu.memory_space<vmem>>, vector<1x8xf32>,
    %c1_i32 = arith.constant 1 : i32
    %15 = arith.cmpi eq, %arg1, %c1_i32 : i32
    %16 = arith.extui %15 : i1 to i32
    %c0_i32_15 = arith.constant 0 : i32
    %17 = arith.cmpi ne, %16, %c0_i32_15 : i32
    scf.if %17 {
      %c0_16 = arith.constant 0 : index
      %c0_17 = arith.constant 0 : index
      %18 = vector.load %arg10[%c0_16, %c0_17] : memref<1x8xf32, #tpu.memory_space<vmem>>, vector<1x8xf32>
      %cst_18 = arith.constant 0.00347222225 : f32
      %19 = vector.broadcast %cst_18 : f32 to vector<1x8xf32>
      %20 = arith.mulf %18, %19 : vector<1x8xf32>
      %c0_19 = arith.constant 0 : index
      %c0_20 = arith.constant 0 : index
      %21 = vector.load %arg5[%c0_19, %c0_20] : memref<1x8xf32, #tpu.memory_space<vmem>>, vector<1x8xf32>
      %22 = arith.addf %20, %21 : vector<1x8xf32>
      %c0_21 = arith.constant 0 : index
      %c0_22 = arith.constant 0 : index
      %c0_23 = arith.constant 0 : index
      %23 = vector.load %arg4[%c0_21, %c0_22, %c0_23] : memref<1x1x8xf32, #tpu.memory_space<vmem>>, vector<1x1x8xf32>
      %24 = vector.shape_cast %23 : vector<1x1x8xf32> to vector<1x8xf32>
      %c0_24 = arith.constant 0 : index
      %c0_25 = arith.constant 0 : index
      %25 = vector.load %arg6[%c0_24, %c0_25] : memref<8x8xf32, #tpu.memory_space<vmem>>, vector<8x8xf32>
      %cst_26 = arith.constant dense<0.000000e+00> : vector<1x8xf32>
      %26 = tpu.matmul %22, %25, %cst_26 {dimension_numbers = #tpu.dot_dimension_numbers<[1], [0], [0], [1], [0, 0, 1, 1], [], []>} : vector<1x8xf32>, vector<8x8xf32>, vector<1x8xf32> -> vector<1x8xf32>
      %c0_27 = arith.constant 0 : index
      %c0_28 = arith.constant 0 : index
      %27 = vector.load %arg7[%c0_27, %c0_28] : memref<8x8xf32, #tpu.memory_space<vmem>>, vector<8x8xf32>
      %cst_29 = arith.constant dense<0.000000e+00> : vector<1x8xf32>
      %28 = tpu.matmul %24, %27, %cst_29 {dimension_numbers = #tpu.dot_dimension_numbers<[1], [0], [0], [1], [0, 0, 1, 1], [], []>} : vector<1x8xf32>, vector<8x8xf32>, vector<1x8xf32> -> vector<1x8xf32>
      %29 = arith.addf %26, %28 : vector<1x8xf32>
      %c0_30 = arith.constant 0 : index
      %c0_31 = arith.constant 0 : index
      %30 = vector.load %arg8[%c0_30, %c0_31] : memref<1x8xf32, #tpu.memory_space<vmem>>, vector<1x8xf32>
      %31 = arith.addf %29, %30 : vector<1x8xf32>
      %32 = vector.shape_cast %31 : vector<1x8xf32> to vector<1x1x8xf32>
      %c0_32 = arith.constant 0 : index
      %c0_33 = arith.constant 0 : index
      %c0_34 = arith.constant 0 : index
      %33 = vector.load %arg9[%c0_32, %c0_33, %c0_34] : memref<1x1x8xf32, #tpu.memory_space<vmem>>, vector<1x1x8xf32>
      tpu.vector_store %arg9[%c0_32, %c0_33, %c0_34], %32 {strides = array<i32>} : memref<1x1x8xf32, #tpu.memory_space<vmem>>, vector<1x1x8xf32>,
    } else {
    }
    return
  }
  func.func @transform_0(%arg0: i32, %arg1: i32) -> (i32, i32, i32) {
    %c0_i32 = arith.constant 0 : i32
    %c0_i32_0 = arith.constant 0 : i32
    return %arg0, %arg1, %c0_i32 : i32, i32, i32
  }
  func.func @transform_1(%arg0: i32, %arg1: i32) -> (i32, i32) {
    %c0_i32 = arith.constant 0 : i32
    %c0_i32_0 = arith.constant 0 : i32
    return %arg1, %c0_i32 : i32, i32
  }
  func.func @transform_2(%arg0: i32, %arg1: i32) -> (i32, i32, i32) {
    %c0_i32 = arith.constant 0 : i32
    %c0_i32_0 = arith.constant 0 : i32
    %c0_i32_1 = arith.constant 0 : i32
    return %arg0, %c0_i32, %c0_i32_0 : i32, i32, i32
  }
  func.func @transform_3(%arg0: i32, %arg1: i32) -> (i32, i32) {
    %c0_i32 = arith.constant 0 : i32
    %c0_i32_0 = arith.constant 0 : i32
    %c0_i32_1 = arith.constant 0 : i32
    return %c0_i32, %c0_i32_0 : i32, i32
  }
  func.func @transform_4(%arg0: i32, %arg1: i32) -> (i32, i32) {
    %c0_i32 = arith.constant 0 : i32
    %c0_i32_0 = arith.constant 0 : i32
    %c0_i32_1 = arith.constant 0 : i32
    return %c0_i32, %c0_i32_0 : i32, i32
  }
  func.func @transform_5(%arg0: i32, %arg1: i32) -> (i32, i32) {
    %c0_i32 = arith.constant 0 : i32
    %c0_i32_0 = arith.constant 0 : i32
    %c0_i32_1 = arith.constant 0 : i32
    return %c0_i32, %c0_i32_0 : i32, i32
  }
  func.func @transform_6(%arg0: i32, %arg1: i32) -> (i32, i32) {
    %c0_i32 = arith.constant 0 : i32
    %c0_i32_0 = arith.constant 0 : i32
    %c0_i32_1 = arith.constant 0 : i32
    return %c0_i32, %c0_i32_0 : i32, i32
  }
  func.func @transform_7(%arg0: i32, %arg1: i32) -> (i32, i32, i32) {
    %c0_i32 = arith.constant 0 : i32
    %c0_i32_0 = arith.constant 0 : i32
    %c0_i32_1 = arith.constant 0 : i32
    return %arg0, %c0_i32, %c0_i32_0 : i32, i32, i32
  }
}

</mosaic_0001>

<bundles_post_ra>
// kernel: tpu_custom_call.1
= control target key start
LH: loop header
LB: loop body
LE: loop exit
PB: predicated region body
PF: predicated region fallthrough
CT: control target
= control target key end

     0   :  { %s1361_s0 = inlined_call_operand.hbm [shape: f32[2,32,288], index: 0, kind: input, shape index: {}]   ;;  %s1362_s1 = inlined_call_operand.vmem [shape: f32[32,8], index: 1, kind: input, shape index: {}]   ;;  %s1363_s2 = inlined_call_operand.vmem [shape: f32[2,1,8], index: 2, kind: input, shape index: {}]   ;;  %s1364_s3 = inlined_call_operand.vmem [shape: f32[1,8], index: 3, kind: input, shape index: {}]   ;;  %s1365_s4 = inlined_call_operand.vmem [shape: f32[8,8], index: 4, kind: input, shape index: {}]   ;;  %s1366_s5 = inlined_call_operand.vmem [shape: f32[8,8], index: 5, kind: input, shape index: {}]   ;;  %s1367_s6 = inlined_call_operand.vmem [shape: f32[1,8], index: 6, kind: input, shape index: {}]   ;;  %s1368_s7 = inlined_call_operand.hbm [shape: f32[2,1,8], index: 7, kind: output, shape index: {}]  }
   0x1   :  { %1376 = sst [smem:[#allocation16_spill]] %s1368_s7 }
   0x2   :  { %12 = vsyncpa [#allocation4], 0 }
   0x3   :  { %14 = vsyncpa [#allocation4 + $0x1], 0 }
   0x4   :  { %15 = vsyncpa [#allocation5], 0 }
   0x5   :  { %17 = vsyncpa [#allocation5 + $0x1], 0  ;;  %s1109_s24 = smov 0   ;;  %s1111_s25 = smov 0  }
   0x6   :  { %s1113_s26 = smov 0   ;;  %s1115_s27 = smov 0  }
   0x7   :  { %s1117_s28 = smov 0   ;;  %s1119_s29 = smov 0  }
   0x8   :  { %s1121_s30 = smov 0   ;;  %s1123_s8 = smov 0  }
   0x9   :  { %s1125_s9 = smov 0   ;;  %s1127_s10 = smov 0  }
   0xa   :  { %s1129_s11 = smov 0  }
   0xb LB: > { %1377 = sst [smem:[#allocation9_spill]] %s1025_s26  ;;  %s746_s12 = sadd.s32 4294967295, %s1057_s11   ;;  %s1057_s11 = sphi %s1129_s11, %s23_s11   ;;  %s1053_s10 = sphi %s1127_s10, %s1406_s10   ;;  %s1049_s9 = sphi %s1125_s9, %s1405_s9   ;;  %s1045_s8 = sphi %s1123_s8, %s1404_s8   ;;  %s1041_s30 = sphi %s1121_s30, %s1397_s30   ;;  %s1037_s29 = sphi %s1119_s29, %s1396_s29   ;;  %s1033_s28 = sphi %s1117_s28, %s1403_s28   ;;  %s1029_s27 = sphi %s1115_s27, %s1402_s27   ;;  %s1025_s26 = sphi %s1113_s26, %s1394_s26   ;;  %s1021_s25 = sphi %s1111_s25, %s1401_s25   ;;  %s1017_s24 = sphi %s1109_s24, %s1400_s24  }
   0xc   : > { %1378 = sst [smem:[#allocation10_spill]] %s1037_s29  ;;  %s747_s13 = sadd.s32 4294967294, %s1057_s11  }
   0xd   : > { %1379 = sst [smem:[#allocation11_spill]] %s1049_s9  ;;  %s32_s14 = sadd.s32 1, %s1049_s9 }
   0xe   : > { %s35_s15 = sadd.s32 1, %s1053_s10  ;;  %p33_p0 = scmp.ge.s32.totalorder %s32_s14, 2 }
   0xf   : > { %s44_s16 = sadd.s32 1, %s1037_s29  ;;  %p51_p1 = scmp.ne.s32.totalorder %s1037_s29, %s1033_s28 }
  0x10   : > { %p52_p2 = scmp.eq.s32.totalorder %s1057_s11, 0  ;;  %s1408_s14 = smov (%p33_p0, %s32_s14), 0 }
  0x11   : > { %1380 = sst [smem:[#allocation12_spill]] %s1408_s14  ;;  %s1410_s15 = smov (!%p33_p0, %s35_s15), %s1053_s10 }
  0x12   : > { %s40_s17 = ssub.s32 %s1049_s9, %s1408_s14  ;;  %p1175_p3 = por %p52_p2, %p51_p1 }
  0x13   : > { %p37_p4 = scmp.ge.s32.totalorder %s1410_s15, 2  ;;  %p57_p5 = scmp.ne.s32.totalorder %s1033_s28, %s1029_s27 }
  0x14   : > { %p58_p6 = scmp.eq.s32.totalorder %s746_s12, 0  ;;  %s206_s19 = sadd.s32 1, %s1025_s26 }
  0x15   : > { %s1412_s15 = smov (%p37_p4, %s1410_s15), 0  ;;  %p216_p8 = scmp.ne.s32.totalorder %s1025_s26, %s1021_s25 }
  0x16   : > { %1382 = sst [smem:[#allocation13_spill]] %s1412_s15  ;;  %p1183_p7 = por %p58_p6, %p57_p5 }
  0x17   : > { %s39_s21 = ssub.s32 %s1053_s10, %s1412_s15  ;;  %p217_p9 = scmp.eq.s32.totalorder %s746_s12, 3 }
  0x18   : > { %s41_s22 = sor.u32 %s40_s17, %s39_s21  ;;  %p204_p10 = scmp.eq.s32.totalorder %s39_s21, 0 }
  0x19   : > { %p42_p11 = scmp.eq.s32.totalorder %s41_s22, 0  ;;  %p1191_p12 = por %p217_p9, %p216_p8 }
  0x1a   : > { %s1196_s27 = scalar_select %p204_p10, %s1025_s26, %s206_s19  }
  0x1b   : > { %s1384_s23 = scalar_select %p1191_p12, 1, 0 }
  0x1c   : > { %1385 = sst [smem:[#allocation14_spill]] %s1196_s27  ;;  %p222_p13 = scmp.ne.s32.totalorder %s1021_s25, %s1017_s24 }
  0x1d   : > { %s1199_s14 = scalar_select %p42_p11, %s1037_s29, %s44_s16  }
  0x1e   : > { %p223_p0 = scmp.eq.s32.totalorder %s747_s13, 3  ;;  %p807_p1 = scmp.lt.s32.totalorder %s1057_s11, 4 }
  0x1f   : > { %1386 = sst [smem:[#allocation15_spill]] %s1199_s14  ;;  %s255_s15 = sand.u32 1, %s1037_s29  }
  0x20   : > { %p1204_p2 = por %p223_p0, %p222_p13  ;;  %s791_s12 = smul.u32 48, %s255_s15 }
  0x21   : > { %s792_s17 = smul.u32 6, %s1049_s9  ;;  %p1212_p4 = pnand %p807_p1, %p1175_p3 }
  0x22   : > { %s1387_s7 = scalar_select %p1204_p2, 1, 0 }
  0x23   : > { %s793_s19 = smul.u32 12, %s1053_s10  ;;  %s259_s16 = scalar_lea.vmem [#allocation3], %s791_s12 }
  0x24   : > { %s269_s22 = sshll.u32 %s259_s16, 4  ;;  %s1224_s18 = scalar_lea.sflag [#allocation4], %s255_s15  ;;  %s1217_s22 = int_to_ptr.vmem [resolvable:$true] %s269_s22 }
  0x25   : > { %s266_s14 = sadd.s32 %s793_s19, %s792_s17  ;;  %p907_p5 = pneg %p1212_p4 }
  0x26   : > { %s752_s13 = sshll.u32 %s266_s14, 7  ;;  %s910_s26 = scalar_lea.hbm %s1361_s0, 3072 }
  0x27   : > { %s1222_s29 = scalar_lea.hbm %s1361_s0, %s752_s13 }
  0x28   : > { %s905_s9 = scalar_lea.hbm %s1222_s29, 768  ;;  %p911_p9 = scmp.lt.u32.totalorder %s1222_s29, %s1361_s0 }
  0x29   : > { %p906_p3 = scmp.ne.s32.totalorder %s1222_s29, %s905_s9  ;;  %p912_p10 = scmp.lt.u32.totalorder %s910_s26, %s905_s9 }
  0x2a   : > { %p914_p13 = scmp.lt.u32.totalorder %s905_s9, %s1222_s29 }
  0x2b   : > { %p908_p6 = pnand %p907_p5, %p906_p3  ;;  %p913_p11 = por %p912_p10, %p911_p9 }
  0x2d   : > { %p909_p8 = pneg %p908_p6  ;;  %p915_p0 = por %p914_p13, %p913_p11 }
  0x2f   : > { %p916_p1 = pnand %p915_p0, %p909_p8 }
  0x31   : > { %919 = shalt.err (!%p916_p1)
}
  0x32   : > { %s920_s15 = scalar_lea.vmem %s1217_s22, 768  ;;  %s1059_s19 = smov [#allocation3]  }
  0x33   : > { %p921_p3 = scmp.ne.s32.totalorder %s1217_s22, %s920_s15  ;;  %s925_s16 = sshll.u32 %s1059_s19, 4  ;;  %s926_s16 = int_to_ptr.vmem [resolvable:$false] %s925_s16 }
  0x34   : > { %s927_s13 = scalar_lea.vmem %s926_s16, 1536  ;;  %p928_p12 = scmp.lt.s32.totalorder %s1217_s22, %s926_s16 }
  0x35   : > { %p923_p6 = pnand %p921_p3, %p907_p5  ;;  %p929_p9 = scmp.lt.s32.totalorder %s927_s13, %s920_s15 }
  0x37   : > { %p924_p2 = pneg %p923_p6  ;;  %p930_p10 = por %p929_p9, %p928_p12 }
  0x39   : > { %p931_p11 = pnand %p930_p10, %p924_p2 }
  0x3b   : > { %934 = shalt.err (!%p931_p11)
}
  0x3c   : > { %s1060_s9 = smov 384   ;;  %s1061_s14 = smov 24  }
  0x3d   : > { %802 = dma.hbm_to_vmem [thread:$0]  (!%p1212_p4), %s1222_s29, 768, %s1217_s22, %s1224_s18, %s1060_s9, %s1060_s9, %s1061_s14  }
  0x3e   : > { %p753_p5 = scmp.ge.s32.totalorder %s1057_s11, 1  ;;  %p292_p8 = scmp.lt.s32.totalorder %s1057_s11, 5 }
  0x40   : > { %p293_p13 = pnand %p753_p5, %p292_p8 }
  0x41   : > { %s298_s12 = sand.u32 (!%p293_p13), 1, %s1033_s28  }
  0x42   : > { %296 = sbr.rel (%p293_p13) target bundleno = 710 (0x2c6), region = 48  ;;  %s299_s27 = scalar_lea.sflag (!%p293_p13), [#allocation4], %s298_s12 }
  0x43   : > { %s794_s26 = smul.u32 (!%p293_p13), 48, %s298_s12 }
  0x45   : > { %s302_s17 = scalar_lea.vmem (!%p293_p13), [#allocation3], %s794_s26 }
  0x49   : > { %1008 = dma.done.wait (%p1183_p7), %s299_s27, 768  }
  0x4a   : > { %1010 = vsyncadd (%p1183_p7), %s299_s27, 4294966528  ;;  %s338_s29 = sand.u32 1, %s1021_s25   ;;  %s754_s21 = sshll.u32 %s1041_s30, 1 }
  0x4b   : > { %p342_p12 = scmp.lt.s32.totalorder %s754_s21, 3  ;;  %p347_p2 = scmp.lt.s32.totalorder %s1045_s8, 1 }
  0x4c   : > { %s1274_s14 = scalar_lea.vmem [#allocation6], %s338_s29  ;;  %p756_p7 = scmp.ne.s32.totalorder %s1041_s30, 0 }
  0x4d   : > { %s1414_s21 = smov (!%p342_p12, %s754_s21), 3  ;;  %vm354_vm0 = vcmask (!%p756_p7), 57344   ;;  %v1062_v0 = vmov (!%p756_p7), 0.0  }
  0x4e   : > { %s1263_s22 = scalar_select %p347_p2, %s1045_s8, 1 }
  0x4f   : > { %s755_s18 = sshll.u32 %s1414_s21, 3  ;;  %353 = sbr.rel (%p756_p7) target bundleno = 86 (0x56), region = 56  ;;  %355 = vst.msk [vmem:[#allocation2] sm:$0x1] (!%p756_p7), %vm354_vm0, %v1062_v0 }
  0x50   : > { %s345_s16 = scalar_lea.vmem %s1362_s1, %s755_s18  ;;  %s349_s9 = scalar_lea.vmem %s1363_s2, %s1263_s22 }
  0x56 PF: > { %v366_v1 = vld [vmem:[%s302_s17 + $0x10] sm:$0xff]  ;;  %vm368_vm1 = vcmask 261120   ;;  %v356_v2 = vld [vmem:[%s302_s17] sm:$0xff]  ;;  %v358_v3 = vld [vmem:[%s302_s17 + $0x8] sm:$0xff]  ;;  %v1063_v14 = vmov 0.0|0.0   ;;  %vm1064_vm2 = vmmov 0   ;;  %v382_v16 = vlaneseq }
  0x57   : > { %v369_v4 = vsel %vm368_vm1, %v366_v1, 0.0  ;;  %v360_v5 = vadd.f32 %v358_v3, %v356_v2  ;;  %v367_v6 = vld [vmem:[%s302_s17 + $0x28] sm:$0xff]  ;;  %v357_v7 = vld [vmem:[%s302_s17 + $0x18] sm:$0xff]  ;;  %v359_v8 = vld [vmem:[%s302_s17 + $0x20] sm:$0xff]  ;;  %788 = vmatprep.subr.bf16.mxu0 %v1063_v14  ;;  %v1065_v15 = vmov 0.0   ;;  %vm393_vm3 = vcmask 130112  }
  0x58   : > { %370 = vadd.xlane.f32.xlu1 %v369_v4  ;;  %v372_v9 = vsel %vm368_vm1, %v367_v6, 0.0  ;;  %v361_v10 = vadd.f32 %v359_v8, %v357_v7  ;;  %v378_v11 = vld [vmem:[%s345_s16] sm:$0xff]  ;;  %v379_v12 = vld [vmem:[%s345_s16 + $0x8] sm:$0xff]  ;;  %775 = vmatprep.mubr.msk.f32.mxu0 %vm1064_vm2, %v1065_v15  ;;  %v383_v17 = vand.u32 127, %v382_v16  ;;  %v385_v19 = vshrl.u32 %v382_v16, 7  ;;  %p758_p4 = scmp.ne.s32.totalorder %s1041_s30, 1 }
  0x59   : > { %362 = vadd.xlane.f32.xlu0 %v360_v5  ;;  %v789_v13 = vpack.c.bf16 %v379_v12, %v378_v11  ;;  %vm395_vm4 = vcmask 130048   ;;  %v377_v31 = vld [vmem:[#allocation2] sm:$0x1]  ;;  %vm469_vm5 = vcmask 57344   ;;  %vm482_vm6 = vcmask (!%p758_p4), 64512  }
  0x5a   : > { %v388_v20 = vadd.s32 4294967288, %v383_v17  ;;  %v386_v22 = vsub.s32 %v383_v17, %v385_v19  ;;  %v481_v35 = vld [vmem:[%s1366_s5] sm:$0xff] (!%p758_p4)  ;;  %v1066_v37 = vmov (!%p758_p4), 0.0   ;;  %vm1067_vm7 = vmmov (!%p758_p4), 0  }
  0x5b   : > { %790 = vmatpush3.bf16.msra.mxu0 %v789_v13  ;;  %v479_v36 = vld [vmem:[%s349_s9] sm:$0x1] (!%p758_p4)  ;;  %783 = vmatprep.subr.mxu1 (!%p758_p4), %v1066_v37 }
  0x5c   : > { %373 = vadd.xlane.f32.xlu1 %v372_v9  ;;  %v391_v25 = vsub.s32 %v388_v20, %v385_v19  ;;  %778 = vmatprep.subr.mxu0 (!%p758_p4), %v1066_v37  ;;  %v480_v38 = vld [vmem:[%s1365_s4] sm:$0xff] (!%p758_p4) }
  0x5d   : > { %364 = vadd.xlane.f32.xlu0 %v361_v10  ;;  %v477_v40 = vld [vmem:[%s1364_s3] sm:$0x1] (!%p758_p4)  ;;  %784 = vmatpush3.msra.mxu1 (!%p758_p4), %v480_v38 }
  0x5e   : > { %785 = vmatprep.mubr.msk.f32.mxu1 (!%p758_p4), %vm1067_vm7, %v1066_v37  ;;  %v629_v46 = vld [vmem:[%s1367_s6] sm:$0x1] (!%p758_p4) }
  0xe5   : > { %v371_v18 = vpop.xlane.xlu1 %370 }
  0xe6   : > { %v363_v21 = vpop.xlane.xlu0 %362 }
  0xe7   : > { %v375_v23 = vadd.f32 %v371_v18, %v363_v21 }
  0xe9   : > { %v374_v24 = vpop.xlane.xlu1 %373  ;;  %v387_v28 = vrot.slane %v375_v23, %v386_v22 }
  0xea   : > { %v365_v26 = vpop.xlane.xlu0 %364 }
  0xeb   : > { %v376_v27 = vadd.f32 %v374_v24, %v365_v26 }
  0xed   : > { %v392_v29 = vrot.slane %v376_v27, %v391_v25 }
  0xef   : > { %v394_v30 = vsel %vm393_vm3, %v392_v29, %v387_v28 }
  0xf0   : > { %776 = vmatmul.mubr.msk.f32.vlgmr.msra.gmra.mrb[0].mxu0 %vm395_vm4, %v394_v30 }
  0xf1   : > { %780 = vmatprep.mubr.msk.f32.mxu0 (!%p758_p4), %vm1067_vm7, %v1066_v37  ;;  %779 = vmatpush3.msra.mxu0 (!%p758_p4), %v481_v35 }
 0x1c0   : > { %474 = sbr.rel (%p758_p4) target bundleno = 683 (0x2ab), region = 60 }
 0x1c3   : > { %v464_v32 = vpop.f32.mrb[0].mxu0 }
 0x1c4   : > { %v468_v33 = vadd.f32 %v464_v32, %v377_v31  ;;  %v777_v34 = vpop.f32.mrb[1].mxu0  ;;  %781 = vmatmul.mubr.msk.f32.vlgmr.msra.gmra.mrb[0].mxu0 (!%p758_p4), %vm482_vm6, %v479_v36 }
 0x1c6   : > { %470 = vst.msk [vmem:[#allocation2] sm:$0x1] %vm469_vm5, %v468_v33 }
 0x1cd   : > { %v475_v39 = vld [vmem:[#allocation2] sm:$0x1] }
 0x1ce   : > { %v476_v41 = vmul.f32 0.0034722222, %v475_v39 }
 0x1d0   : > { %v478_v42 = vadd.f32 %v477_v40, %v476_v41 }
 0x1d2   : > { %786 = vmatmul.mubr.msk.f32.vlgmr.msra.gmra.mrb[0].mxu1 %vm482_vm6, %v478_v42 }
 0x297   : > { %v552_v43 = vpop.f32.mrb[0].mxu0 }
 0x298   : > { %v782_v44 = vpop.f32.mrb[1].mxu0 }
 0x2a5   : > { %v625_v45 = vpop.f32.mrb[0].mxu1 }
 0x2a6   : > { %v626_v47 = vadd.f32 %v625_v45, %v552_v43  ;;  %v787_v48 = vpop.f32.mrb[1].mxu1 }
 0x2a8   : > { %v630_v49 = vadd.f32 %v629_v46, %v626_v47 }
 0x2aa   : > { %631 = vst.msk [vmem:[%s1274_s14] sm:$0x1] %vm469_vm5, %v630_v49 }
 0x2ab PF: > { %s761_s16 = sshll.u32 %s1045_s8, 4  ;;  %s1389_s9 = sld [smem:[#allocation16_spill]] }
 0x2ac   : > { %s645_s27 = sshll.u32 %s1274_s14, 4  ;;  %s633_s17 = scalar_lea.sflag [#allocation5], %s338_s29  ;;  %s646_s27 = int_to_ptr.vmem [resolvable:$true] %s645_s27 }
 0x2ad   : > { %s935_s21 = scalar_lea.vmem %s646_s27, 16  ;;  %p1391_p1 = scmp.ne.s32.totalorder %s1384_s23, 0 }
 0x2ae   : > { %p936_p0 = scmp.ne.s32.totalorder %s646_s27, %s935_s21  ;;  %s1068_s18 = smov [#allocation6]  }
 0x2af   : > { %s939_s30 = sshll.u32 %s1068_s18, 4  ;;  %s940_s30 = int_to_ptr.vmem [resolvable:$false] %s939_s30 }
 0x2b0   : > { %p937_p3 = pnand %p936_p0, %p1391_p1  ;;  %s941_s15 = scalar_lea.vmem %s940_s30, 32 }
 0x2b1   : > { %s1390_s12 = smov %s1389_s9  ;;  %s1302_s26 = scalar_lea.hbm %s1389_s9, %s761_s16 }
 0x2b2   : > { %p938_p6 = pneg %p937_p3  ;;  %p942_p9 = scmp.lt.s32.totalorder %s646_s27, %s940_s30 }
 0x2b3   : > { %p943_p10 = scmp.lt.s32.totalorder %s941_s15, %s935_s21 }
 0x2b5   : > { %p944_p11 = por %p943_p10, %p942_p9 }
 0x2b7   : > { %p945_p5 = pnand %p944_p11, %p938_p6 }
 0x2b9   : > { %948 = shalt.err (!%p945_p5)
}
 0x2ba   : > { %s949_s8 = scalar_lea.hbm %s1302_s26, 16  ;;  %s953_s22 = scalar_lea.hbm %s1390_s12, 32 }
 0x2bb   : > { %p950_p8 = scmp.ne.s32.totalorder %s1302_s26, %s949_s8  ;;  %p954_p2 = scmp.lt.u32.totalorder %s1302_s26, %s1390_s12 }
 0x2bc   : > { %p955_p7 = scmp.lt.u32.totalorder %s953_s22, %s949_s8  ;;  %p957_p0 = scmp.lt.u32.totalorder %s949_s8, %s1302_s26 }
 0x2bd   : > { %p951_p13 = pnand %p950_p8, %p1391_p1 }
 0x2be   : > { %p956_p4 = por %p955_p7, %p954_p2 }
 0x2bf   : > { %p952_p12 = pneg %p951_p13 }
 0x2c0   : > { %p958_p3 = por %p957_p0, %p956_p4 }
 0x2c2   : > { %p959_p6 = pnand %p958_p3, %p952_p12 }
 0x2c4   : > { %962 = shalt.err (!%p959_p6)
}
 0x2c5   : > { %797 = dma.vmem_to_hbm [thread:$0]  (%p1391_p1), %s646_s27, 16, %s1302_s26, %s633_s17  }
 0x2c6 PF: > { %p808_p9 = scmp.ge.s32.totalorder %s1057_s11, 2  ;;  %s657_s20 = sand.u32 1, %s1017_s24  }
 0x2c7   : > { %p1392_p10 = scmp.ne.s32.totalorder %s1387_s7, 0  ;;  %s658_s13 = scalar_lea.sflag [#allocation5], %s657_s20 }
 0x2c9   : > { %p804_p11 = pnand %p808_p9, %p1392_p10 }
 0x2cb   : > { %1012 = dma.done.wait (!%p804_p11), %s658_s13, 16  }
 0x2cc   : > { %1014 = vsyncadd (!%p804_p11), %s658_s13, 4294967280  ;;  %s23_s11 = sadd.s32 1, %s1057_s11   ;;  %s1393_s9 = sld [smem:[#allocation9_spill]] }
 0x2cd   : > { %p20_p5 = scmp.ge.s32.totalorder %s23_s11, 6   ;;  %s1394_s26 = sld [smem:[#allocation14_spill]] }
 0x2ce   : > { %s1395_s23 = sld [smem:[#allocation10_spill]]  ;;  %s1396_s29 = sld [smem:[#allocation15_spill]] }
 0x2cf   : > { %s1397_s30 = sld [smem:[#allocation11_spill]]  ;;  %s1398_s17 = sld [smem:[#allocation12_spill]] }
 0x2d0   : > { %s1399_s21 = sld [smem:[#allocation13_spill]]  ;;  %s1400_s24 = smov %s1021_s25 }
 0x2d1   : > { %s1402_s27 = smov %s1033_s28  ;;  %s1404_s8 = smov %s1053_s10 }
 0x2d2   : > { %s1401_s25 = smov %s1393_s9  ;;  %22 = sbr.rel (!%p20_p5) target bundleno = 11 (0xb), region = 107 }
 0x2d4   : > { %s1403_s28 = smov %s1395_s23 }
 0x2d5   : > { %s1405_s9 = smov %s1398_s17 }
 0x2d6   : > { %s1406_s10 = smov %s1399_s21 }
 0x2d9   :  { %662 = vsyncpa [#allocation4], 1 }
 0x2da   :  { %664 = vsyncpa [#allocation4 + $0x1], 1 }
 0x2db   :  { %665 = vsyncpa [#allocation5], 1 }
 0x2dc   :  { %667 = vsyncpa [#allocation5 + $0x1], 1 }

</bundles_post_ra>
